<compile_context>
chip_gen: v7x
topology: tpu7x:2x2x1
jax: 0.10.0
libtpu: 0.0.40
codegen_flags: <defaults>
</compile_context>

<pallas_src>
import math

import numpy as np
import jax
import jax.numpy as jnp
from jax.experimental import pallas as pl
from jax.experimental.pallas import tpu as pltpu


MASK_RATIO = 0.5  # fixed by the module: remain_T = int(T * (1 - 0.5))


def vertical_indexes_np(size: int, rand: int):
    """Deterministic replica of vertical_indexes(); `rand` replaces random.randint(0,1)."""
    s = int(math.isqrt(size))
    fwd = np.arange(size).reshape(s, s)
    if rand == 0:
        fwd = np.concatenate((fwd[:, 0::2].T, fwd[:, 1::2].T)).reshape(-1)
    else:
        fwd = np.concatenate((fwd[:, 1::2].T, fwd[:, 0::2].T)).reshape(-1)
    bwd = np.argsort(fwd)
    return fwd, bwd


def patch_shuffle_vertical_gather(patches, rands):
    """patches: (T, B, C); rands: (B,) int32 coin flips -> (remain_T, B, C).

    Keeps, for each batch b, the patches of grid columns rands[b], rands[b]+2, ...
    in column-major order -- exactly forward_indexes[:remain_T] of the module.
    Best lane efficiency when C >= 128 (ideally a multiple of 128).
    """
    T, B, C = patches.shape
    s = int(math.isqrt(T))
    assert s * s == T, "T must be a perfect square (s x s patch grid)"
    assert s % 2 == 0, "vertical shuffle assumes an even patch-grid side"
    # TODO(synk): remain_T and the parity structure hard-code the module's fixed
    # 0.5 ratio (remain_T == (s//2)*s); a different ratio needs a different kernel.
    remain_T = int(T * (1 - MASK_RATIO))      # == T // 2 == s * (s // 2)
    s_half = s // 2

    # Parity view: source row t -> (t // 2, t % 2).  Free row-major reshape; the
    # trailing dummy axis makes the block's last-two dims equal the full array
    # dims (1, C), so the (8,128) tiling rule never triggers for any B, C.
    x5 = patches.reshape(remain_T, 2, B, 1, C)

    # Coalesce j-iterations so each output store covers a multiple of 8 sublanes
    # whenever possible (s % 8 != 0 would otherwise emit masked partial stores).
    if s % 8 == 0:
        group = 1
    else:
        group = min(max(1, 8 // math.gcd(s, 8)), s_half)

    def kernel(rands_ref, x_ref, o_ref):
        # rands_ref: (B,) int32 in SMEM (scalar prefetch). Parity selection was
        #            already applied by the input index_map, so the body only
        #            performs the in-plane row transpose.
        # x_ref: (T//2, C) kept-parity plane of this batch, rows in source order.
        # o_ref: (T//2, C) shuffled rows:  o[j*s + k] = plane[k*(s//2) + j].
        del rands_ref
        # TODO(synk): for bf16/int8 inputs, bitcast adjacent lane pairs to 32-bit
        # (pltpu.bitcast) before the strided sublane loads to avoid packed-row
        # unpack/repack cost on the VPU/XLU.
        for g0 in range(0, s_half, group):
            cnt = min(group, s_half - g0)
            cols = []
            for j in range(g0, g0 + cnt):
                if s_half > 1:
                    cols.append(x_ref[pl.ds(j, s, stride=s_half), :])
                else:
                    cols.append(x_ref[pl.ds(j, s), :])
            rows = cols[0] if cnt == 1 else jnp.concatenate(cols, axis=0)
            # Load -> store per group keeps live vregs bounded to one group.
            o_ref[g0 * s:(g0 + cnt) * s, :] = rows

    itemsize = jnp.dtype(patches.dtype).itemsize
    blk_bytes = remain_T * C * itemsize               # one input (= one output) block
    # Double-buffered in + out blocks plus slack; explicit so the same tiling is
    # valid from v5e (16 MiB scoped default) up to v7x (64 MiB physical VMEM).
    vmem_limit = int(min(max(4 * blk_bytes + (4 << 20), 16 << 20), 48 << 20))

    out4 = pl.pallas_call(
        kernel,
        out_shape=jax.ShapeDtypeStruct((remain_T, B, 1, C), patches.dtype),
        grid_spec=pltpu.PrefetchScalarGridSpec(
            num_scalar_prefetch=1,           # rands: (B,) int32 -> SMEM
            grid=(B,),                       # one batch per step
            in_specs=[
                # (T//2, C) block = ONLY the rand_b parity plane of batch b;
                # the discarded parity is never read from HBM.
                # TODO(synk): pipeline_mode=pl.Buffered(3) here would further
                # hide DMA startup when (T//2)*C blocks are small.
                pl.BlockSpec((remain_T, None, None, None, C),
                             lambda b, rands: (0, rands[b], b, 0, 0)),
            ],
            out_specs=pl.BlockSpec((remain_T, None, None, C),
                                   lambda b, rands: (0, b, 0, 0)),
        ),
        compiler_params=pltpu.CompilerParams(
            # Disjoint per-batch output blocks -> megacore-safe.
            # TODO(synk): on v7x use dimension_semantics=(pltpu.CORE_PARALLEL,)
            # so both TensorCores split the (bandwidth-bound) batch axis.
            dimension_semantics=("parallel",),
            vmem_limit_bytes=vmem_limit,
        ),
    )(rands.astype(jnp.int32), x5)

    return out4.reshape(remain_T, B, C)               # free reshape


def patch_shuffle_vertical_forward(patches, key):
    """Full forward pass of PatchShuffleVertical (jit-traceable).

    patches: (T, B, C). Returns (patches[:T//2] shuffled, forward_indexes,
    backward_indexes). Indexes are int32 (torch used int64; values < 2**31).
    The per-batch coin flip (random.randint(0, 1) in PyTorch) comes from `key`.
    """
    T, B, C = patches.shape

    # Only two permutations exist; build both once as trace-time constants.
    fwd0_np, bwd0_np = vertical_indexes_np(T, 0)
    fwd1_np, bwd1_np = vertical_indexes_np(T, 1)
    fwd0 = jnp.asarray(fwd0_np, jnp.int32)[:, None]
    fwd1 = jnp.asarray(fwd1_np, jnp.int32)[:, None]
    bwd0 = jnp.asarray(bwd0_np, jnp.int32)[:, None]
    bwd1 = jnp.asarray(bwd1_np, jnp.int32)[:, None]

    rands = jax.random.bernoulli(key, 0.5, (B,)).astype(jnp.int32)  # (B,) on device
    pick0 = rands[None, :] == 0
    forward_indexes = jnp.where(pick0, fwd0, fwd1)                  # (T, B)
    backward_indexes = jnp.where(pick0, bwd0, bwd1)                 # (T, B)

    shuffled = patch_shuffle_vertical_gather(patches, rands)
    return shuffled, forward_indexes, backward_indexes


if __name__ == "__main__":
    def run_case(case_key, T, B, C):
        k_data, k_rand = jax.random.split(case_key)
        patches = jax.random.normal(k_data, (T, B, C), dtype=jnp.float32)

        fwd_fn = jax.jit(patch_shuffle_vertical_forward)
        shuffled, fwd_idx, bwd_idx = fwd_fn(patches, k_rand)
        shuffled = jax.block_until_ready(shuffled)

        remain_T = T // 2
        # Reference (pure JAX) check of the gather + truncation semantics.
        gathered_ref = jnp.take_along_axis(
            patches, jnp.broadcast_to(fwd_idx[:, :, None], (T, B, C)), axis=0
        )[:remain_T]
        assert shuffled.shape == (remain_T, B, C)
        assert fwd_idx.shape == (T, B) and bwd_idx.shape == (T, B)
        assert jnp.allclose(shuffled, gathered_ref)
        # backward_indexes invert forward_indexes
        assert bool(
            jnp.all(jnp.take_along_axis(fwd_idx, bwd_idx, axis=0)
                    == jnp.broadcast_to(jnp.arange(T)[:, None], (T, B)))
        )

    key = jax.random.PRNGKey(0)
    k1, k2 = jax.random.split(key)
    run_case(k1, T=16, B=8, C=128)   # s=4: exercises the coalesced (8-row) store path
    run_case(k2, T=64, B=4, C=256)   # s=8: per-j stores are already tile-aligned

    print("KERNEL_OK")
</pallas_src>

<mosaic_0001>
module attributes {stable_mosaic.version = 11 : i64} {
  func.func @kernel(%arg0: i32, %arg1: memref<8xi32, #tpu.memory_space<smem>>, %arg2: memref<8x1x1x1x128xf32, #tpu.memory_space<vmem>>, %arg3: memref<8x1x1x128xf32, #tpu.memory_space<vmem>>) attributes {dimension_semantics = [#tpu.dimension_semantics<parallel>], iteration_bounds = array<i64: 8>, scalar_prefetch = 1 : i64, scratch_operands = 0 : i64, tpu.core_type = #tpu.core_type<tc>, window_params = [{transform_indices = @transform_0, window_bounds = array<i64: 8, 1, 1, 1, 128>}, {transform_indices = @transform_1, window_bounds = array<i64: 8, 1, 1, 128>}]} {
    %c0 = arith.constant 0 : index
    %c0_0 = arith.constant 0 : index
    %c0_1 = arith.constant 0 : index
    %c0_2 = arith.constant 0 : index
    %c0_3 = arith.constant 0 : index
    %0 = tpu.strided_load %arg2[%c0, %c0_0, %c0_1, %c0_2, %c0_3] {strides = array<i32: 2, 1, 1, 1, 1>} : memref<8x1x1x1x128xf32, #tpu.memory_space<vmem>>, vector<4x1x1x1x128xf32>
    %1 = vector.shape_cast %0 : vector<4x1x1x1x128xf32> to vector<4x128xf32>
    %c1 = arith.constant 1 : index
    %c0_4 = arith.constant 0 : index
    %c0_5 = arith.constant 0 : index
    %c0_6 = arith.constant 0 : index
    %c0_7 = arith.constant 0 : index
    %2 = tpu.strided_load %arg2[%c1, %c0_4, %c0_5, %c0_6, %c0_7] {strides = array<i32: 2, 1, 1, 1, 1>} : memref<8x1x1x1x128xf32, #tpu.memory_space<vmem>>, vector<4x1x1x1x128xf32>
    %3 = vector.shape_cast %2 : vector<4x1x1x1x128xf32> to vector<4x128xf32>
    %4 = tpu.concatenate %1, %3 in 0 : vector<4x128xf32>, vector<4x128xf32> -> vector<8x128xf32>
    %c0_8 = arith.constant 0 : index
    %c0_9 = arith.constant 0 : index
    %c0_10 = arith.constant 0 : index
    %c0_11 = arith.constant 0 : index
    %5 = vector.load %arg3[%c0_8, %c0_9, %c0_10, %c0_11] : memref<8x1x1x128xf32, #tpu.memory_space<vmem>>, vector<8x1x1x128xf32>
    %6 = vector.shape_cast %5 : vector<8x1x1x128xf32> to vector<8x128xf32>
    %7 = vector.shape_cast %4 : vector<8x128xf32> to vector<8x1x1x128xf32>
    tpu.vector_store %arg3[%c0_8, %c0_9, %c0_10, %c0_11], %7 {strides = array<i32>} : memref<8x1x1x128xf32, #tpu.memory_space<vmem>>, vector<8x1x1x128xf32>,
    return
  }
  func.func @transform_0(%arg0: i32, %arg1: memref<8xi32, #tpu.memory_space<smem>>) -> (i32, i32, i32, i32, i32) {
    %0 = arith.index_cast %arg0 : i32 to index
    %1 = memref.load %arg1[%0] : memref<8xi32, #tpu.memory_space<smem>>
    %c0_i32 = arith.constant 0 : i32
    %c0_i32_0 = arith.constant 0 : i32
    %c0_i32_1 = arith.constant 0 : i32
    %c0_i32_2 = arith.constant 0 : i32
    return %c0_i32, %1, %arg0, %c0_i32_0, %c0_i32_1 : i32, i32, i32, i32, i32
  }
  func.func @transform_1(%arg0: i32, %arg1: memref<8xi32, #tpu.memory_space<smem>>) -> (i32, i32, i32, i32) {
    %c0_i32 = arith.constant 0 : i32
    %c0_i32_0 = arith.constant 0 : i32
    %c0_i32_1 = arith.constant 0 : i32
    %c0_i32_2 = arith.constant 0 : i32
    return %c0_i32, %arg0, %c0_i32_0, %c0_i32_1 : i32, i32, i32, i32
  }
}

</mosaic_0001>

<bundles_post_ra>
// kernel: patch_shuffle_vertical_forward.1
= control target key start
LH: loop header
LB: loop body
LE: loop exit
PB: predicated region body
PF: predicated region fallthrough
CT: control target
= control target key end

     0   :  { %s813_s0 = inlined_call_operand.vmem [shape: s32[8], index: 0, kind: input, shape index: {}]   ;;  %s814_s1 = inlined_call_operand.hbm [shape: f32[8,2,8,1,128], index: 1, kind: input, shape index: {}]   ;;  %s815_s2 = inlined_call_operand.hbm [shape: f32[8,8,1,128], index: 2, kind: output, shape index: {}]  }
   0x1   :  { %s7_s11 = sshll.u32 %s813_s0, 4  ;;  %s8_s11 = int_to_ptr.vmem [resolvable:$true] %s7_s11 }
   0x2   :  { %s446_s12 = scalar_lea.vmem %s8_s11, 16  ;;  %p451_p1 = scmp.lt.s32.totalorder %s8_s11, %s8_s11 }
   0x3   :  { %p447_p0 = scmp.ne.s32.totalorder %s8_s11, %s446_s12  ;;  %p452_p2 = scmp.lt.s32.totalorder %s446_s12, %s446_s12 }
   0x5   :  { %p453_p3 = por %p452_p2, %p451_p1 }
   0x7   :  { %p454_p4 = pnand %p453_p3, %p447_p0 }
   0x9   :  { %457 = shalt.err (!%p454_p4)  }
   0xa   :  { %s582_s13 = smov [#allocation3]  }
   0xb   :  { %10 = dma.vmem_to_smem %s8_s11, 16, %s582_s13, [#allocation2] }
   0xc   :  { %544 = dma.done.wait [#allocation2], 16 }
   0xd   :  { %545 = vsyncadd [#allocation2], 4294967280 }
   0xe   :  { %12 = sfence }
   0xf   :  { %13 = vsyncpa [#allocation5], 0 }
  0x10   :  { %15 = vsyncpa [#allocation5 + $0x1], 0 }
  0x11   :  { %16 = vsyncpa [#allocation6], 0 }
  0x12   :  { %18 = vsyncpa [#allocation6 + $0x1], 0  ;;  %s610_s14 = smov 0   ;;  %s612_s0 = smov 0  }
  0x13   :  { %s614_s15 = smov 0   ;;  %s616_s16 = smov 0  }
  0x14   :  { %s618_s17 = smov 0   ;;  %s620_s18 = smov 0  }
  0x15   :  { %s622_s19 = smov 0  }
  0x16 LB: > { %s644_s20 = sadd.s32 4294967295, %s580_s19   ;;  %s647_s21 = sadd.s32 1, %s580_s19   ;;  %s580_s19 = sphi %s622_s19, %s832_s19   ;;  %s576_s18 = sphi %s620_s18, %s831_s18   ;;  %s572_s17 = sphi %s618_s17, %s830_s17   ;;  %s568_s16 = sphi %s616_s16, %s829_s16   ;;  %s564_s15 = sphi %s614_s15, %s828_s15   ;;  %s560_s0 = sphi %s612_s0, %s827_s0   ;;  %s556_s14 = sphi %s610_s14, %s826_s14  }
  0x17   : > { %s28_s22 = sld [smem:[#allocation3 + %s580_s19]]  ;;  %s343_s23 = sadd.s32 4294967294, %s580_s19  }
  0x18   : > { %s29_s24 = sld [smem:[#allocation3 + %s647_s21]]  ;;  %s31_s25 = ssub.s32 %s580_s19, %s647_s21 }
  0x19   : > { %s35_s26 = sadd.s32 1, %s576_s18  ;;  %p42_p5 = scmp.ne.s32.totalorder %s576_s18, %s572_s17 }
  0x1a   : > { %p48_p6 = scmp.ne.s32.totalorder %s572_s17, %s568_s16  ;;  %p43_p7 = scmp.eq.s32.totalorder %s580_s19, 0 }
  0x1b   : > { %p49_p8 = scmp.eq.s32.totalorder %s644_s20, 0  ;;  %p59_p9 = scmp.eq.s32.totalorder %s31_s25, 0 }
  0x1c   : > { %s61_s27 = sadd.s32 1, %s564_s15  ;;  %p71_p11 = scmp.ne.s32.totalorder %s564_s15, %s560_s0 }
  0x1d   : > { %p661_p10 = por %p49_p8, %p48_p6  ;;  %p72_p12 = scmp.eq.s32.totalorder %s644_s20, 7 }
  0x1e   : > { %s30_s29 = ssub.s32 %s28_s22, %s29_s24  ;;  %p77_p13 = scmp.ne.s32.totalorder %s560_s0, %s556_s14 }
  0x1f   : > { %s818_s28 = scalar_select %p661_p10, 1, 0 }
  0x20   : > { %s32_s30 = sor.u32 %s31_s25, %s30_s29  ;;  %p670_p1 = por %p72_p12, %p71_p11 }
  0x21   : > { %p33_p0 = scmp.eq.s32.totalorder %s32_s30, 0  ;;  %p78_p2 = scmp.eq.s32.totalorder %s343_s23, 7 }
  0x22   : > { %s819_s3 = scalar_select %p670_p1, 1, 0 }
  0x23   : > { %s675_s4 = scalar_select %p59_p9, %s564_s15, %s61_s27  }
  0x24   : > { %s678_s5 = scalar_select %p33_p0, %s576_s18, %s35_s26  }
  0x25   : > { %p44_p3 = por %p43_p7, %p42_p5  ;;  %s98_s6 = sand.u32 1, %s576_s18  }
  0x26   : > { %p686_p4 = por %p78_p2, %p77_p13  ;;  %p380_p6 = scmp.lt.s32.totalorder %s580_s19, 8 }
  0x27   : > { %s346_s8 = sshll.u32 %s98_s6, 3  ;;  %p349_p5 = scmp.ge.s32.totalorder %s580_s19, 1 }
  0x28   : > { %s820_s7 = scalar_select %p686_p4, 1, 0 }
  0x29   : > { %p691_p8 = pnand %p380_p6, %p44_p3  ;;  %s102_s13 = scalar_lea.vmem [#allocation4], %s346_s8 }
  0x2a   : > { %s364_s10 = scalar_select %p44_p3, [#allocation3], [#allocation8] }
  0x2b   : > { %s365_s11 = scalar_select %p44_p3, %s580_s19, 0 }
  0x2c   : > { %s834_s10 = smov (!%p380_p6, %s364_s10), [#allocation9]  ;;  %s111_s16 = sshll.u32 %s102_s13, 4  ;;  %s702_s16 = int_to_ptr.vmem [resolvable:$true] %s111_s16 }
  0x2d   : > { %s836_s11 = smov (!%p380_p6, %s365_s11), 0  ;;  %p119_p7 = scmp.lt.s32.totalorder %s580_s19, 9 }
  0x2e   : > { %s103_s12 = sld [smem:[%s834_s10 + %s836_s11]]  ;;  %s710_s30 = scalar_lea.sflag [#allocation5], %s98_s6 }
  0x2f   : > { %p698_p9 = pnand %p349_p5, %p119_p7  ;;  %p460_p12 = pneg %p691_p8 }
  0x34   : > { %s347_s23 = sshll.u32 %s103_s12, 3  ;;  %s463_s12 = scalar_lea.hbm %s814_s1, 2048 }
  0x35   : > { %s108_s24 = sadd.s32 %s580_s19, %s347_s23 }
  0x36   : > { %s348_s25 = sshll.u32 %s108_s24, 4 }
  0x37   : > { %s708_s29 = scalar_lea.hbm %s814_s1, %s348_s25 }
  0x38   : > { %s458_s8 = scalar_lea.hbm %s708_s29, 128  ;;  %p464_p2 = scmp.lt.u32.totalorder %s708_s29, %s814_s1 }
  0x39   : > { %p459_p11 = scmp.ne.s32.totalorder %s708_s29, %s458_s8  ;;  %p465_p3 = scmp.lt.u32.totalorder %s463_s12, %s458_s8 }
  0x3a   : > { %p467_p5 = scmp.lt.u32.totalorder %s458_s8, %s708_s29 }
  0x3b   : > { %p461_p13 = pnand %p460_p12, %p459_p11  ;;  %p466_p6 = por %p465_p3, %p464_p2 }
  0x3d   : > { %p462_p0 = pneg %p461_p13  ;;  %p468_p7 = por %p467_p5, %p466_p6 }
  0x3f   : > { %p469_p4 = pnand %p468_p7, %p462_p0 }
  0x41   : > { %472 = shalt.err (!%p469_p4)
}
  0x42   : > { %s473_s6 = scalar_lea.vmem %s702_s16, 128  ;;  %s583_s24 = smov [#allocation4]  }
  0x43   : > { %p474_p11 = scmp.ne.s32.totalorder %s702_s16, %s473_s6  ;;  %s478_s25 = sshll.u32 %s583_s24, 4  ;;  %s479_s25 = int_to_ptr.vmem [resolvable:$false] %s478_s25 }
  0x44   : > { %s480_s26 = scalar_lea.vmem %s479_s25, 256  ;;  %p481_p10 = scmp.lt.s32.totalorder %s702_s16, %s479_s25 }
  0x45   : > { %p476_p13 = pnand %p474_p11, %p460_p12  ;;  %p482_p2 = scmp.lt.s32.totalorder %s480_s26, %s473_s6 }
  0x47   : > { %p477_p1 = pneg %p476_p13  ;;  %p483_p3 = por %p482_p2, %p481_p10 }
  0x49   : > { %p484_p6 = pnand %p483_p3, %p477_p1 }
  0x4b   : > { %487 = shalt.err (!%p484_p6)
}
  0x4c   : > { %s584_s27 = smov 256   ;;  %s585_s8 = smov 16  }
  0x4d   : > { %s586_s10 = smov 1   ;;  %123 = sbr.rel (%p698_p9) target bundleno = 122 (0x7a), region = 24 }
  0x4e   : > { %375 = dma.hbm_to_vmem [thread:$0]  (!%p691_p8), %s708_s29, 128, %s702_s16, %s710_s30, %s584_s27, %s585_s8, %s586_s10  }
  0x4f   : > { %s125_s11 = sand.u32 (!%p698_p9), 1, %s572_s17   ;;  %p823_p10 = scmp.ne.s32.totalorder (!%p698_p9), %s818_s28, 0 }
  0x50   : > { %s350_s12 = sshll.u32 (!%p698_p9), %s125_s11, 3  ;;  %s126_s13 = scalar_lea.sflag (!%p698_p9), [#allocation5], %s125_s11 }
  0x51   : > { %s129_s23 = scalar_lea.vmem (!%p698_p9), [#allocation4], %s350_s12 }
  0x54   : > { %547 = dma.done.wait (%p823_p10), %s126_s13, 128  }
  0x55   : > { %549 = vsyncadd (%p823_p10), %s126_s13, 4294967168  ;;  %v194_v0 = vlaneseq  ;;  %v587_v1 = vmov 1966171168   ;;  %vm163_vm0 = vcmask 1041409   ;;  %vm166_vm1 = vcmask 1042434   ;;  %s145_s9 = sand.u32 1, %s560_s0  }
  0x56   : > { %v192_v2 = vunpack.c.l.s4 %v587_v1  ;;  %vm169_vm2 = vcmask 1043459   ;;  %vm178_vm3 = vcmask 1045509   ;;  %vm181_vm4 = vcmask 1046534   ;;  %v149_v4 = vld [vmem:[%s129_s23] sm:$0x1]  ;;  %s351_s28 = sshll.u32 %s145_s9, 3 }
  0x57   : > { %v195_v3 = vshrl.u32 %v194_v0, 7  ;;  %v150_v5 = vld [vmem:[%s129_s23 + $0x2] sm:$0x1]  ;;  %v151_v6 = vld [vmem:[%s129_s23 + $0x4] sm:$0x1]  ;;  %vm184_vm5 = vcmask 1047559  }
  0x58   : > { %v152_v7 = vld [vmem:[%s129_s23 + $0x6] sm:$0x1]  ;;  %v352_v8 = vld [vmem:[%s129_s23 + $0x1] sm:$0x1]  ;;  %v353_v9 = vld [vmem:[%s129_s23 + $0x3] sm:$0x1]  ;;  %v193_v10 = vunpack.c.0.s8 %v192_v2 }
  0x59   : > { %v354_v11 = vld [vmem:[%s129_s23 + $0x5] sm:$0x1]  ;;  %v355_v12 = vld [vmem:[%s129_s23 + $0x7] sm:$0x1]  ;;  %v162_v13 = vrot.slane %v150_v5, 7  ;;  %v165_v14 = vrot.slane %v151_v6, 6 }
  0x5a   : > { %v168_v15 = vrot.slane %v152_v7, 5  ;;  %v176_v16 = vrot.slane %v352_v8, 4  ;;  %v177_v17 = vrot.slane %v353_v9, 3  ;;  %v180_v18 = vrot.slane %v354_v11, 2  ;;  %s147_s16 = scalar_lea.vmem [#allocation7], %s351_s28  ;;  %s361_s29 = sshll.u32 %s644_s20, 4 }
  0x5b   : > { %v164_v19 = vsel %vm163_vm0, %v162_v13, %v149_v4  ;;  %v183_v20 = vrot.slane %v355_v12, 1  ;;  %vm187_vm6 = vcmask 1043456   ;;  %v196_v23 = vsub.s32 %v193_v10, %v195_v3  ;;  %s268_s22 = sshll.u32 %s147_s16, 4  ;;  %s759_s24 = scalar_lea.hbm %s815_s2, %s361_s29  ;;  %s754_s22 = int_to_ptr.vmem [resolvable:$true] %s268_s22 }
  0x5c   : > { %v167_v21 = vsel %vm166_vm1, %v165_v14, %v164_v19  ;;  %v179_v22 = vsel %vm178_vm3, %v177_v17, %v176_v16  ;;  %s763_s20 = scalar_lea.sflag [#allocation6], %s145_s9  ;;  %s488_s25 = scalar_lea.vmem %s754_s22, 128 }
  0x5d   : > { %v170_v24 = vsel %vm169_vm2, %v168_v15, %v167_v21  ;;  %v182_v25 = vsel %vm181_vm4, %v180_v18, %v179_v22  ;;  %p489_p1 = scmp.ne.s32.totalorder %s754_s22, %s488_s25  ;;  %p824_p4 = scmp.ne.s32.totalorder %s819_s3, 0 }
  0x5e   : > { %v185_v26 = vsel %vm184_vm5, %v183_v20, %v182_v25  ;;  %s588_s26 = smov [#allocation7]  }
  0x5f   : > { %v188_v27 = vsel %vm187_vm6, %v170_v24, %v185_v26  ;;  %p490_p8 = pnand %p489_p1, %p824_p4  ;;  %s492_s27 = sshll.u32 %s588_s26, 4  ;;  %s493_s27 = int_to_ptr.vmem [resolvable:$false] %s492_s27 }
  0x60   : > { %v197_v28 = vrot.slane %v188_v27, %v196_v23  ;;  %v190_v29 = vcombine.high %v188_v27, %v188_v27  ;;  %s494_s8 = scalar_lea.vmem %s493_s27, 256  ;;  %p495_p12 = scmp.lt.s32.totalorder %s754_s22, %s493_s27 }
  0x61   : > { %p491_p9 = pneg %p490_p8  ;;  %p496_p0 = scmp.lt.s32.totalorder %s494_s8, %s488_s25 }
  0x62   : > { %356 = vst.sshfl [vmem:[%s147_s16] sm:$0x1 pattern:$0x73625140] %v197_v28  ;;  %v205_v30 = vcombine.high %v197_v28, %v197_v28  ;;  %v213_v31 = vrot.slane %v197_v28, %v196_v23  ;;  %v204_v32 = vrot.slane %v190_v29, %v196_v23 }
  0x63   : > { %p497_p5 = por %p496_p0, %p495_p12 }
  0x64   : > { %357 = vst.sshfl [vmem:[%s147_s16 + $0x1] sm:$0x1 pattern:$0x73625140] %v205_v30  ;;  %v235_v33 = vcombine.high %v213_v31, %v213_v31  ;;  %v227_v34 = vrot.slane %v205_v30, %v196_v23  ;;  %v206_v35 = vcombine.high %v204_v32, %v204_v32  ;;  %v220_v36 = vrot.slane %v204_v32, %v196_v23 }
  0x65   : > { %358 = vst.sshfl [vmem:[%s147_s16 + $0x4] sm:$0x1 pattern:$0x73625140] %v204_v32  ;;  %p498_p7 = pnand %p497_p5, %p491_p9 }
  0x66   : > { %249 = vst [vmem:[%s147_s16 + $0x2] sm:$0x1] %v235_v33  ;;  %v237_v37 = vcombine.high %v227_v34, %v227_v34  ;;  %359 = vst.sshfl [vmem:[%s147_s16 + $0x5] sm:$0x1 pattern:$0x73625140] %v206_v35  ;;  %v236_v38 = vcombine.high %v220_v36, %v220_v36  ;;  %v234_v39 = vrot.slane %v206_v35, %v196_v23 }
  0x68   : > { %250 = vst [vmem:[%s147_s16 + $0x3] sm:$0x1] %v237_v37  ;;  %253 = vst [vmem:[%s147_s16 + $0x6] sm:$0x1] %v236_v38  ;;  %v238_v40 = vcombine.high %v234_v39, %v234_v39 }
  0x6a   : > { %254 = vst [vmem:[%s147_s16 + $0x7] sm:$0x1] %v238_v40 }
  0x6b   : > { %501 = shalt.err (!%p498_p7)
}
  0x6c   : > { %s502_s10 = scalar_lea.hbm %s759_s24, 128  ;;  %s506_s13 = scalar_lea.hbm %s815_s2, 1024 }
  0x6d   : > { %p503_p11 = scmp.ne.s32.totalorder %s759_s24, %s502_s10  ;;  %p507_p3 = scmp.lt.u32.totalorder %s759_s24, %s815_s2 }
  0x6e   : > { %p508_p6 = scmp.lt.u32.totalorder %s506_s13, %s502_s10  ;;  %p510_p1 = scmp.lt.u32.totalorder %s502_s10, %s759_s24 }
  0x6f   : > { %p504_p13 = pnand %p503_p11, %p824_p4 }
  0x70   : > { %p509_p10 = por %p508_p6, %p507_p3 }
  0x71   : > { %p505_p2 = pneg %p504_p13 }
  0x72   : > { %p511_p8 = por %p510_p1, %p509_p10 }
  0x74   : > { %p512_p9 = pnand %p511_p8, %p505_p2 }
  0x76   : > { %515 = shalt.err (!%p512_p9)
}
  0x77   : > { %s589_s28 = smov 16   ;;  %s590_s16 = smov 128  }
  0x78   : > { %s591_s29 = smov 1  }
  0x79   : > { %368 = dma.vmem_to_hbm [thread:$0]  (%p824_p4), %s754_s22, 128, %s759_s24, %s763_s20, %s589_s28, %s590_s16, %s591_s29  }
  0x7a PF: > { %p381_p12 = scmp.ge.s32.totalorder %s580_s19, 2  ;;  %s283_s30 = sand.u32 1, %s556_s14  }
  0x7b   : > { %p825_p0 = scmp.ne.s32.totalorder %s820_s7, 0  ;;  %s284_s6 = scalar_lea.sflag [#allocation6], %s283_s30 }
  0x7d   : > { %p377_p5 = pnand %p381_p12, %p825_p0 }
  0x7f   : > { %551 = dma.done.wait (!%p377_p5), %s284_s6, 128  }
  0x80   : > { %553 = vsyncadd (!%p377_p5), %s284_s6, 4294967168  ;;  %p21_p4 = scmp.ge.s32.totalorder %s647_s21, 10   ;;  %s826_s14 = smov %s560_s0 }
  0x81   : > { %s827_s0 = smov %s564_s15  ;;  %s828_s15 = smov %s675_s4 }
  0x82   : > { %s829_s16 = smov %s572_s17  ;;  %s830_s17 = smov %s576_s18 }
  0x83   : > { %s831_s18 = smov %s678_s5  ;;  %s832_s19 = smov %s647_s21 }
  0x84   :  { %23 = sbr.rel (!%p21_p4) target bundleno = 22 (0x16), region = 70 }
  0x8b   :  { %289 = vsyncpa [#allocation5], 1 }
  0x8c   :  { %291 = vsyncpa [#allocation5 + $0x1], 1 }
  0x8d   :  { %292 = vsyncpa [#allocation6], 1 }
  0x8e   :  { %294 = vsyncpa [#allocation6 + $0x1], 1 }

</bundles_post_ra>
